<compile_context>
chip_gen: v5e
topology: v5e:2x2
jax: 0.10.0
libtpu: 0.0.40
codegen_flags: <defaults>
</compile_context>

<pallas_src>
import math
import jax
import jax.numpy as jnp
from jax.experimental import pallas as pl
from jax.experimental.pallas import tpu as pltpu


def _gcn_kernel(x_ref, adjA_ref, adjA2_ref,
                wcat_ref, wkA_ref, wkA2_ref, wkM_ref,
                attvec_ref,                  # SMEM (3, 3), already divided by T
                out_ref,
                hcat_ref, ocat_ref):         # VMEM scratch, per-batch persistent
    F = out_ref.shape[-1]                    # F_out
    H = wkA_ref.shape[-1] // 2               # hidden
    tile_n = adjA_ref.shape[1]

    row = pl.program_id(1)
    n_rows = pl.num_programs(1)

    # --- once per batch element: fused feature transform x @ [W_A | W_A2 | W_mlp] ---
    @pl.when(row == 0)
    def _():
        hcat_ref[...] = jnp.dot(x_ref[0], wcat_ref[...],
                                preferred_element_type=jnp.float32)

    # --- per node-row tile: the two adjacency matmuls + ReLU --------------------
    adj_dt = adjA_ref.dtype
    hA = hcat_ref[:, 0:F].astype(adj_dt)          # (N, F)
    hA2 = hcat_ref[:, F:2 * F].astype(adj_dt)     # (N, F)
    out_A_t = jnp.maximum(
        jnp.dot(adjA_ref[0], hA, preferred_element_type=jnp.float32), 0.0)
    out_A2_t = jnp.maximum(
        jnp.dot(adjA2_ref[0], hA2, preferred_element_type=jnp.float32), 0.0)

    row_start = pl.multiple_of(row * tile_n, tile_n)
    h_rows = hcat_ref[pl.ds(row_start, tile_n), :]        # (tile_n, 3F)
    out_mlp_t = jnp.maximum(h_rows[:, 2 * F:3 * F], 0.0)

    ocat_ref[pl.ds(row_start, tile_n), :] = jnp.concatenate(
        [out_A_t, out_A2_t, out_mlp_t], axis=-1)

    # --- last row tile: attention keys + softmax mixing over the full node set ---
    @pl.when(row == n_rows - 1)
    def _():
        ocat = ocat_ref[...]                                   # (N, 3F)
        out_A = ocat[:, 0:F]
        out_A2 = ocat[:, F:2 * F]
        out_mlp = ocat[:, 2 * F:3 * F]

        # One (F, 2H) matmul per branch: [key projection | per-node projection].
        pA = jnp.dot(out_A, wkA_ref[...], preferred_element_type=jnp.float32)
        pA2 = jnp.dot(out_A2, wkA2_ref[...], preferred_element_type=jnp.float32)
        pM = jnp.dot(out_mlp, wkM_ref[...], preferred_element_type=jnp.float32)

        k0 = jnp.mean(pA[:, 0:H], axis=0, keepdims=True)       # (1, H)
        k1 = jnp.mean(pA2[:, 0:H], axis=0, keepdims=True)
        k2 = jnp.mean(pM[:, 0:H], axis=0, keepdims=True)

        l0 = jnp.sum(pA[:, H:] * k2, axis=-1, keepdims=True)   # (N, 1)
        l1 = jnp.sum(pA2[:, H:] * k0, axis=-1, keepdims=True)
        l2 = jnp.sum(pM[:, H:] * k1, axis=-1, keepdims=True)

        s0 = jax.nn.sigmoid(l0)
        s1 = jax.nn.sigmoid(l1)
        s2 = jax.nn.sigmoid(l2)

        # att_vec is already divided by T on the host.
        g0 = s0 * attvec_ref[0, 0] + s1 * attvec_ref[1, 0] + s2 * attvec_ref[2, 0]
        g1 = s0 * attvec_ref[0, 1] + s1 * attvec_ref[1, 1] + s2 * attvec_ref[2, 1]
        g2 = s0 * attvec_ref[0, 2] + s1 * attvec_ref[1, 2] + s2 * attvec_ref[2, 2]

        m = jnp.maximum(jnp.maximum(g0, g1), g2)
        e0 = jnp.exp(g0 - m)
        e1 = jnp.exp(g1 - m)
        e2 = jnp.exp(g2 - m)
        inv = pl.reciprocal(e0 + e1 + e2, approx=False)        # EUP, not VPU divides
        a0, a1, a2 = e0 * inv, e1 * inv, e2 * inv

        out_ref[0] = 3.0 * (a0 * out_A + a1 * out_A2 + a2 * out_mlp)


def _pick_tile_n(N, adj_itemsize):
    """Largest node-row tile (multiple of 8, divides N) whose double-buffered
    adjacency working set (2 matrices x 2 buffers x tile_n x N) stays ~<= 24 MiB."""
    if N % 8 != 0:
        return N
    budget = 24 * 1024 * 1024
    max_rows = max(8, budget // (4 * N * adj_itemsize))
    for cand in (512, 256, 128, 64, 32, 16, 8):
        if N % cand == 0 and cand <= max_rows:
            return cand
    return N


def graph_convolution(inputx, adj_A, adj_A2, params, *, tile_n=None,
                      adj_dtype=jnp.float32):
    """Pallas forward pass of GraphConvolution. inputx: (B, N, F_in)."""
    B, N, Fin = inputx.shape
    Fout = params["weight_A"].shape[1]
    H = params["W_k0"].shape[1]

    # Host-side weight fusion: 3 matmuls -> 1 (feature transform), 6 -> 3 (projections).
    w_cat = jnp.concatenate(
        [params["weight_A"], params["weight_A2"], params["weight_mlp"]], axis=1)
    wk_A = jnp.concatenate([params["W_k0"], params["att_vec_A"]], axis=1)
    wk_A2 = jnp.concatenate([params["W_k1"], params["att_vec_A2"]], axis=1)
    wk_M = jnp.concatenate([params["W_k2"], params["att_vec_mlp"]], axis=1)
    att_vec_t = (params["att_vec"] / 3.0).astype(jnp.float32)   # pre-divide by T

    # Optional bf16 adjacency stream (halves the dominant HBM traffic).
    adj_A = adj_A.astype(adj_dtype)
    adj_A2 = adj_A2.astype(adj_dtype)

    if tile_n is None:
        tile_n = _pick_tile_n(N, jnp.dtype(adj_dtype).itemsize)
    assert N % tile_n == 0 and (tile_n % 8 == 0 or tile_n == N), (N, tile_n)
    n_row_tiles = N // tile_n

    full2d = lambda shape: pl.BlockSpec(shape, lambda b, r: (0, 0))

    return pl.pallas_call(
        _gcn_kernel,
        out_shape=jax.ShapeDtypeStruct((B, N, Fout), jnp.float32),
        grid=(B, n_row_tiles),
        in_specs=[
            pl.BlockSpec((1, N, Fin), lambda b, r: (b, 0, 0)),     # x (resident per b)
            pl.BlockSpec((1, tile_n, N), lambda b, r: (b, r, 0)),  # adj_A row tile
            pl.BlockSpec((1, tile_n, N), lambda b, r: (b, r, 0)),  # adj_A2 row tile
            full2d((Fin, 3 * Fout)),                               # [W_A | W_A2 | W_mlp]
            full2d((Fout, 2 * H)),                                 # [W_k0 | att_vec_A]
            full2d((Fout, 2 * H)),                                 # [W_k1 | att_vec_A2]
            full2d((Fout, 2 * H)),                                 # [W_k2 | att_vec_mlp]
            pl.BlockSpec(memory_space=pltpu.MemorySpace.SMEM),     # att_vec / T (3, 3)
        ],
        out_specs=pl.BlockSpec((1, N, Fout), lambda b, r: (b, 0, 0)),
        scratch_shapes=[
            pltpu.VMEM((N, 3 * Fout), jnp.float32),   # h_cat = x @ [W_A|W_A2|W_mlp]
            pltpu.VMEM((N, 3 * Fout), jnp.float32),   # relu'd branch outputs
        ],
        compiler_params=pltpu.CompilerParams(
            dimension_semantics=("parallel", "arbitrary"),
            vmem_limit_bytes=48 * 1024 * 1024,        # headroom below v7x's 64 MiB
        ),
    )(inputx, adj_A, adj_A2, w_cat, wk_A, wk_A2, wk_M, att_vec_t)


def graph_convolution_ref(inputx, adj_A, adj_A2, p):
    """Pure-JAX reference matching the PyTorch forward exactly."""
    relu = lambda v: jnp.maximum(v, 0.0)
    out_A = relu(jnp.matmul(adj_A, jnp.matmul(inputx, p["weight_A"])))
    out_A2 = relu(jnp.matmul(adj_A2, jnp.matmul(inputx, p["weight_A2"])))
    out_mlp = relu(jnp.matmul(inputx, p["weight_mlp"]))

    T = 3.0
    k0 = jnp.mean(jnp.matmul(out_A, p["W_k0"]), axis=1, keepdims=True)
    k1 = jnp.mean(jnp.matmul(out_A2, p["W_k1"]), axis=1, keepdims=True)
    k2 = jnp.mean(jnp.matmul(out_mlp, p["W_k2"]), axis=1, keepdims=True)
    k0 = jnp.transpose(k0, (0, 2, 1))
    k1 = jnp.transpose(k1, (0, 2, 1))
    k2 = jnp.transpose(k2, (0, 2, 1))
    cat = jnp.concatenate([
        jnp.matmul(jnp.matmul(out_A, p["att_vec_A"]), k2),
        jnp.matmul(jnp.matmul(out_A2, p["att_vec_A2"]), k0),
        jnp.matmul(jnp.matmul(out_mlp, p["att_vec_mlp"]), k1),
    ], axis=2)
    att = jax.nn.softmax(jnp.matmul(jax.nn.sigmoid(cat), p["att_vec"]) / T, axis=2)
    a0, a1, a2 = att[:, :, 0:1], att[:, :, 1:2], att[:, :, 2:3]
    return 3.0 * (a0 * out_A + a1 * out_A2 + a2 * out_mlp)


def init_params(key, in_features, out_features, hidden):
    """Deterministic init mirroring reset_parameters (uniform with per-group std)."""
    stdv = 1.0 / math.sqrt(out_features)
    std_att = 1.0 / math.sqrt(hidden)
    std_k = 1.0 / math.sqrt(hidden)
    std_att_vec = 1.0 / math.sqrt(3)
    keys = jax.random.split(key, 10)
    u = lambda k, shp, s: jax.random.uniform(k, shp, jnp.float32, -s, s)
    return {
        "W_k0": u(keys[0], (out_features, hidden), std_k),
        "W_k1": u(keys[1], (out_features, hidden), std_k),
        "W_k2": u(keys[2], (out_features, hidden), std_k),
        "weight_A": u(keys[3], (in_features, out_features), stdv),
        "weight_A2": u(keys[4], (in_features, out_features), stdv),
        "weight_mlp": u(keys[5], (in_features, out_features), stdv),
        "att_vec_A": u(keys[6], (out_features, hidden), std_att),
        "att_vec_A2": u(keys[7], (out_features, hidden), std_att),
        "att_vec_mlp": u(keys[8], (out_features, hidden), std_att),
        "att_vec": u(keys[9], (3, 3), std_att_vec),
    }


if __name__ == "__main__":
    B, N = 2, 16
    in_features, out_features, hidden = 8, 32, 16

    key = jax.random.PRNGKey(0)
    k_x, k_a1, k_a2, k_p = jax.random.split(key, 4)

    inputx = jax.random.normal(k_x, (B, N, in_features), jnp.float32)
    adj_A = jax.nn.softmax(jax.random.normal(k_a1, (B, N, N), jnp.float32), axis=-1)
    adj_A2 = jnp.matmul(adj_A, adj_A)  # 2-hop adjacency
    params = init_params(k_p, in_features, out_features, hidden)

    # tile_n=8 -> two node-row tiles per batch element, exercising the tiled path.
    out = graph_convolution(inputx, adj_A, adj_A2, params, tile_n=8)
    out = jax.block_until_ready(out)

    ref = graph_convolution_ref(inputx, adj_A, adj_A2, params)
    assert out.shape == (B, N, out_features)
    assert jnp.allclose(out, ref, rtol=1e-4, atol=1e-5), (
        f"max abs err {jnp.max(jnp.abs(out - ref))}")

    print("KERNEL_OK")
</pallas_src>

<mosaic_0001>
module attributes {stable_mosaic.version = 11 : i64} {
  func.func @_gcn_kernel(%arg0: i32, %arg1: i32, %arg2: memref<1x16x8xf32, #tpu.memory_space<vmem>>, %arg3: memref<1x8x16xf32, #tpu.memory_space<vmem>>, %arg4: memref<1x8x16xf32, #tpu.memory_space<vmem>>, %arg5: memref<8x96xf32, #tpu.memory_space<vmem>>, %arg6: memref<32x32xf32, #tpu.memory_space<vmem>>, %arg7: memref<32x32xf32, #tpu.memory_space<vmem>>, %arg8: memref<32x32xf32, #tpu.memory_space<vmem>>, %arg9: memref<3x3xf32, #tpu.memory_space<smem>>, %arg10: memref<1x16x32xf32, #tpu.memory_space<vmem>>, %arg11: memref<16x96xf32, #tpu.memory_space<vmem>>, %arg12: memref<16x96xf32, #tpu.memory_space<vmem>>) attributes {dimension_semantics = [#tpu.dimension_semantics<parallel>, #tpu.dimension_semantics<arbitrary>], iteration_bounds = array<i64: 2, 2>, scalar_prefetch = 0 : i64, scratch_operands = 2 : i64, tpu.core_type = #tpu.core_type<tc>, window_params = [{transform_indices = @transform_0, window_bounds = array<i64: 1, 16, 8>}, {transform_indices = @transform_1, window_bounds = array<i64: 1, 8, 16>}, {transform_indices = @transform_2, window_bounds = array<i64: 1, 8, 16>}, {pipeline_mode = #tpu.pipeline_mode<synchronous>, transform_indices = @transform_3, window_bounds = array<i64: 8, 96>}, {pipeline_mode = #tpu.pipeline_mode<synchronous>, transform_indices = @transform_4, window_bounds = array<i64: 32, 32>}, {pipeline_mode = #tpu.pipeline_mode<synchronous>, transform_indices = @transform_5, window_bounds = array<i64: 32, 32>}, {pipeline_mode = #tpu.pipeline_mode<synchronous>, transform_indices = @transform_6, window_bounds = array<i64: 32, 32>}, {transform_indices = @transform_7, window_bounds = array<i64: 3, 3>}, {transform_indices = @transform_8, window_bounds = array<i64: 1, 16, 32>}]} {
    %c0_i32 = arith.constant 0 : i32
    %0 = arith.cmpi eq, %arg1, %c0_i32 : i32
    %1 = arith.extui %0 : i1 to i32
    %c0_i32_0 = arith.constant 0 : i32
    %2 = arith.cmpi ne, %1, %c0_i32_0 : i32
    scf.if %2 {
      %c0_16 = arith.constant 0 : index
      %c0_17 = arith.constant 0 : index
      %c0_18 = arith.constant 0 : index
      %28 = vector.load %arg2[%c0_16, %c0_17, %c0_18] : memref<1x16x8xf32, #tpu.memory_space<vmem>>, vector<1x16x8xf32>
      %29 = vector.shape_cast %28 : vector<1x16x8xf32> to vector<16x8xf32>
      %c0_19 = arith.constant 0 : index
      %c0_20 = arith.constant 0 : index
      %30 = vector.load %arg5[%c0_19, %c0_20] : memref<8x96xf32, #tpu.memory_space<vmem>>, vector<8x96xf32>
      %cst_21 = arith.constant dense<0.000000e+00> : vector<16x96xf32>
      %31 = tpu.matmul %29, %30, %cst_21 {dimension_numbers = #tpu.dot_dimension_numbers<[1], [0], [0], [1], [0, 0, 1, 1], [], []>} : vector<16x8xf32>, vector<8x96xf32>, vector<16x96xf32> -> vector<16x96xf32>
      %c0_22 = arith.constant 0 : index
      %c0_23 = arith.constant 0 : index
      %32 = vector.load %arg11[%c0_22, %c0_23] : memref<16x96xf32, #tpu.memory_space<vmem>>, vector<16x96xf32>
      tpu.vector_store %arg11[%c0_22, %c0_23], %31 {strides = array<i32>} : memref<16x96xf32, #tpu.memory_space<vmem>>, vector<16x96xf32>,
    } else {
    }
    %c0 = arith.constant 0 : index
    %c0_1 = arith.constant 0 : index
    %3 = vector.load %arg11[%c0, %c0_1] : memref<16x96xf32, #tpu.memory_space<vmem>>, vector<16x32xf32>
    %c0_2 = arith.constant 0 : index
    %c32 = arith.constant 32 : index
    %4 = vector.load %arg11[%c0_2, %c32] : memref<16x96xf32, #tpu.memory_space<vmem>>, vector<16x32xf32>
    %c0_3 = arith.constant 0 : index
    %c0_4 = arith.constant 0 : index
    %c0_5 = arith.constant 0 : index
    %5 = vector.load %arg3[%c0_3, %c0_4, %c0_5] : memref<1x8x16xf32, #tpu.memory_space<vmem>>, vector<1x8x16xf32>
    %6 = vector.shape_cast %5 : vector<1x8x16xf32> to vector<8x16xf32>
    %cst = arith.constant dense<0.000000e+00> : vector<8x32xf32>
    %7 = tpu.matmul %6, %3, %cst {dimension_numbers = #tpu.dot_dimension_numbers<[1], [0], [0], [1], [0, 0, 1, 1], [], []>} : vector<8x16xf32>, vector<16x32xf32>, vector<8x32xf32> -> vector<8x32xf32>
    %cst_6 = arith.constant 0.000000e+00 : f32
    %8 = vector.broadcast %cst_6 : f32 to vector<8x32xf32>
    %9 = arith.maximumf %7, %8 : vector<8x32xf32>
    %c0_7 = arith.constant 0 : index
    %c0_8 = arith.constant 0 : index
    %c0_9 = arith.constant 0 : index
    %10 = vector.load %arg4[%c0_7, %c0_8, %c0_9] : memref<1x8x16xf32, #tpu.memory_space<vmem>>, vector<1x8x16xf32>
    %11 = vector.shape_cast %10 : vector<1x8x16xf32> to vector<8x16xf32>
    %cst_10 = arith.constant dense<0.000000e+00> : vector<8x32xf32>
    %12 = tpu.matmul %11, %4, %cst_10 {dimension_numbers = #tpu.dot_dimension_numbers<[1], [0], [0], [1], [0, 0, 1, 1], [], []>} : vector<8x16xf32>, vector<16x32xf32>, vector<8x32xf32> -> vector<8x32xf32>
    %cst_11 = arith.constant 0.000000e+00 : f32
    %13 = vector.broadcast %cst_11 : f32 to vector<8x32xf32>
    %14 = arith.maximumf %12, %13 : vector<8x32xf32>
    %c8_i32 = arith.constant 8 : i32
    %15 = arith.muli %arg1, %c8_i32 : i32
    %16 = tpu.assume_multiple %15, 8 : i32
    %17 = arith.index_cast %16 : i32 to index
    %c0_12 = arith.constant 0 : index
    %18 = vector.load %arg11[%17, %c0_12] : memref<16x96xf32, #tpu.memory_space<vmem>>, vector<8x96xf32>
    %19 = vector.extract_strided_slice %18 {offsets = [0, 64], sizes = [8, 32], strides = [1, 1]} : vector<8x96xf32> to vector<8x32xf32>
    %cst_13 = arith.constant 0.000000e+00 : f32
    %20 = vector.broadcast %cst_13 : f32 to vector<8x32xf32>
    %21 = arith.maximumf %19, %20 : vector<8x32xf32>
    %22 = tpu.concatenate %9, %14, %21 in 1 : vector<8x32xf32>, vector<8x32xf32>, vector<8x32xf32> -> vector<8x96xf32>
    %23 = arith.index_cast %16 : i32 to index
    %c0_14 = arith.constant 0 : index
    %24 = vector.load %arg12[%23, %c0_14] : memref<16x96xf32, #tpu.memory_space<vmem>>, vector<8x96xf32>
    tpu.vector_store %arg12[%23, %c0_14], %22 {strides = array<i32>} : memref<16x96xf32, #tpu.memory_space<vmem>>, vector<8x96xf32>,
    %c1_i32 = arith.constant 1 : i32
    %25 = arith.cmpi eq, %arg1, %c1_i32 : i32
    %26 = arith.extui %25 : i1 to i32
    %c0_i32_15 = arith.constant 0 : i32
    %27 = arith.cmpi ne, %26, %c0_i32_15 : i32
    scf.if %27 {
      %c0_16 = arith.constant 0 : index
      %c0_17 = arith.constant 0 : index
      %28 = vector.load %arg12[%c0_16, %c0_17] : memref<16x96xf32, #tpu.memory_space<vmem>>, vector<16x96xf32>
      %29 = vector.extract_strided_slice %28 {offsets = [0, 0], sizes = [16, 32], strides = [1, 1]} : vector<16x96xf32> to vector<16x32xf32>
      %30 = vector.extract_strided_slice %28 {offsets = [0, 32], sizes = [16, 32], strides = [1, 1]} : vector<16x96xf32> to vector<16x32xf32>
      %31 = vector.extract_strided_slice %28 {offsets = [0, 64], sizes = [16, 32], strides = [1, 1]} : vector<16x96xf32> to vector<16x32xf32>
      %c0_18 = arith.constant 0 : index
      %c0_19 = arith.constant 0 : index
      %32 = vector.load %arg6[%c0_18, %c0_19] : memref<32x32xf32, #tpu.memory_space<vmem>>, vector<32x32xf32>
      %cst_20 = arith.constant dense<0.000000e+00> : vector<16x32xf32>
      %33 = tpu.matmul %29, %32, %cst_20 {dimension_numbers = #tpu.dot_dimension_numbers<[1], [0], [0], [1], [0, 0, 1, 1], [], []>} : vector<16x32xf32>, vector<32x32xf32>, vector<16x32xf32> -> vector<16x32xf32>
      %c0_21 = arith.constant 0 : index
      %c0_22 = arith.constant 0 : index
      %34 = vector.load %arg7[%c0_21, %c0_22] : memref<32x32xf32, #tpu.memory_space<vmem>>, vector<32x32xf32>
      %cst_23 = arith.constant dense<0.000000e+00> : vector<16x32xf32>
      %35 = tpu.matmul %30, %34, %cst_23 {dimension_numbers = #tpu.dot_dimension_numbers<[1], [0], [0], [1], [0, 0, 1, 1], [], []>} : vector<16x32xf32>, vector<32x32xf32>, vector<16x32xf32> -> vector<16x32xf32>
      %c0_24 = arith.constant 0 : index
      %c0_25 = arith.constant 0 : index
      %36 = vector.load %arg8[%c0_24, %c0_25] : memref<32x32xf32, #tpu.memory_space<vmem>>, vector<32x32xf32>
      %cst_26 = arith.constant dense<0.000000e+00> : vector<16x32xf32>
      %37 = tpu.matmul %31, %36, %cst_26 {dimension_numbers = #tpu.dot_dimension_numbers<[1], [0], [0], [1], [0, 0, 1, 1], [], []>} : vector<16x32xf32>, vector<32x32xf32>, vector<16x32xf32> -> vector<16x32xf32>
      %38 = vector.extract_strided_slice %33 {offsets = [0, 0], sizes = [16, 16], strides = [1, 1]} : vector<16x32xf32> to vector<16x16xf32>
      %cst_27 = arith.constant dense<0.000000e+00> : vector<16xf32>
      %39 = vector.multi_reduction <add>, %38, %cst_27 [0] : vector<16x16xf32> to vector<16xf32>
      %40 = vector.shape_cast %39 : vector<16xf32> to vector<1x16xf32>
      %cst_28 = arith.constant 1.600000e+01 : f32
      %41 = vector.broadcast %cst_28 : f32 to vector<1x16xf32>
      %42 = arith.divf %40, %41 : vector<1x16xf32>
      %43 = vector.extract_strided_slice %35 {offsets = [0, 0], sizes = [16, 16], strides = [1, 1]} : vector<16x32xf32> to vector<16x16xf32>
      %cst_29 = arith.constant dense<0.000000e+00> : vector<16xf32>
      %44 = vector.multi_reduction <add>, %43, %cst_29 [0] : vector<16x16xf32> to vector<16xf32>
      %45 = vector.shape_cast %44 : vector<16xf32> to vector<1x16xf32>
      %cst_30 = arith.constant 1.600000e+01 : f32
      %46 = vector.broadcast %cst_30 : f32 to vector<1x16xf32>
      %47 = arith.divf %45, %46 : vector<1x16xf32>
      %48 = vector.extract_strided_slice %37 {offsets = [0, 0], sizes = [16, 16], strides = [1, 1]} : vector<16x32xf32> to vector<16x16xf32>
      %cst_31 = arith.constant dense<0.000000e+00> : vector<16xf32>
      %49 = vector.multi_reduction <add>, %48, %cst_31 [0] : vector<16x16xf32> to vector<16xf32>
      %50 = vector.shape_cast %49 : vector<16xf32> to vector<1x16xf32>
      %cst_32 = arith.constant 1.600000e+01 : f32
      %51 = vector.broadcast %cst_32 : f32 to vector<1x16xf32>
      %52 = arith.divf %50, %51 : vector<1x16xf32>
      %53 = vector.extract_strided_slice %33 {offsets = [0, 16], sizes = [16, 16], strides = [1, 1]} : vector<16x32xf32> to vector<16x16xf32>
      %54 = vector.broadcast %52 : vector<1x16xf32> to vector<16x16xf32>
      %55 = arith.mulf %53, %54 : vector<16x16xf32>
      %cst_33 = arith.constant dense<0.000000e+00> : vector<16xf32>
      %56 = vector.multi_reduction <add>, %55, %cst_33 [1] : vector<16x16xf32> to vector<16xf32>
      %57 = vector.shape_cast %56 : vector<16xf32> to vector<16x1xf32>
      %58 = vector.extract_strided_slice %35 {offsets = [0, 16], sizes = [16, 16], strides = [1, 1]} : vector<16x32xf32> to vector<16x16xf32>
      %59 = vector.broadcast %42 : vector<1x16xf32> to vector<16x16xf32>
      %60 = arith.mulf %58, %59 : vector<16x16xf32>
      %cst_34 = arith.constant dense<0.000000e+00> : vector<16xf32>
      %61 = vector.multi_reduction <add>, %60, %cst_34 [1] : vector<16x16xf32> to vector<16xf32>
      %62 = vector.shape_cast %61 : vector<16xf32> to vector<16x1xf32>
      %63 = vector.extract_strided_slice %37 {offsets = [0, 16], sizes = [16, 16], strides = [1, 1]} : vector<16x32xf32> to vector<16x16xf32>
      %64 = vector.broadcast %47 : vector<1x16xf32> to vector<16x16xf32>
      %65 = arith.mulf %63, %64 : vector<16x16xf32>
      %cst_35 = arith.constant dense<0.000000e+00> : vector<16xf32>
      %66 = vector.multi_reduction <add>, %65, %cst_35 [1] : vector<16x16xf32> to vector<16xf32>
      %67 = vector.shape_cast %66 : vector<16xf32> to vector<16x1xf32>
      %68 = arith.negf %57 : vector<16x1xf32>
      %69 = math.exp %68 : vector<16x1xf32>
      %cst_36 = arith.constant 1.000000e+00 : f32
      %70 = vector.broadcast %cst_36 : f32 to vector<16x1xf32>
      %71 = arith.addf %70, %69 : vector<16x1xf32>
      %72 = arith.divf %70, %71 : vector<16x1xf32>
      %73 = arith.negf %62 : vector<16x1xf32>
      %74 = math.exp %73 : vector<16x1xf32>
      %cst_37 = arith.constant 1.000000e+00 : f32
      %75 = vector.broadcast %cst_37 : f32 to vector<16x1xf32>
      %76 = arith.addf %75, %74 : vector<16x1xf32>
      %77 = arith.divf %75, %76 : vector<16x1xf32>
      %78 = arith.negf %67 : vector<16x1xf32>
      %79 = math.exp %78 : vector<16x1xf32>
      %cst_38 = arith.constant 1.000000e+00 : f32
      %80 = vector.broadcast %cst_38 : f32 to vector<16x1xf32>
      %81 = arith.addf %80, %79 : vector<16x1xf32>
      %82 = arith.divf %80, %81 : vector<16x1xf32>
      %c0_39 = arith.constant 0 : index
      %c0_40 = arith.constant 0 : index
      %83 = memref.load %arg9[%c0_39, %c0_40] : memref<3x3xf32, #tpu.memory_space<smem>>
      %84 = vector.broadcast %83 : f32 to vector<16x1xf32>
      %85 = arith.mulf %72, %84 : vector<16x1xf32>
      %c1 = arith.constant 1 : index
      %c0_41 = arith.constant 0 : index
      %86 = memref.load %arg9[%c1, %c0_41] : memref<3x3xf32, #tpu.memory_space<smem>>
      %87 = vector.broadcast %86 : f32 to vector<16x1xf32>
      %88 = arith.mulf %77, %87 : vector<16x1xf32>
      %89 = arith.addf %85, %88 : vector<16x1xf32>
      %c2 = arith.constant 2 : index
      %c0_42 = arith.constant 0 : index
      %90 = memref.load %arg9[%c2, %c0_42] : memref<3x3xf32, #tpu.memory_space<smem>>
      %91 = vector.broadcast %90 : f32 to vector<16x1xf32>
      %92 = arith.mulf %82, %91 : vector<16x1xf32>
      %93 = arith.addf %89, %92 : vector<16x1xf32>
      %c0_43 = arith.constant 0 : index
      %c1_44 = arith.constant 1 : index
      %94 = memref.load %arg9[%c0_43, %c1_44] : memref<3x3xf32, #tpu.memory_space<smem>>
      %95 = vector.broadcast %94 : f32 to vector<16x1xf32>
      %96 = arith.mulf %72, %95 : vector<16x1xf32>
      %c1_45 = arith.constant 1 : index
      %c1_46 = arith.constant 1 : index
      %97 = memref.load %arg9[%c1_45, %c1_46] : memref<3x3xf32, #tpu.memory_space<smem>>
      %98 = vector.broadcast %97 : f32 to vector<16x1xf32>
      %99 = arith.mulf %77, %98 : vector<16x1xf32>
      %100 = arith.addf %96, %99 : vector<16x1xf32>
      %c2_47 = arith.constant 2 : index
      %c1_48 = arith.constant 1 : index
      %101 = memref.load %arg9[%c2_47, %c1_48] : memref<3x3xf32, #tpu.memory_space<smem>>
      %102 = vector.broadcast %101 : f32 to vector<16x1xf32>
      %103 = arith.mulf %82, %102 : vector<16x1xf32>
      %104 = arith.addf %100, %103 : vector<16x1xf32>
      %c0_49 = arith.constant 0 : index
      %c2_50 = arith.constant 2 : index
      %105 = memref.load %arg9[%c0_49, %c2_50] : memref<3x3xf32, #tpu.memory_space<smem>>
      %106 = vector.broadcast %105 : f32 to vector<16x1xf32>
      %107 = arith.mulf %72, %106 : vector<16x1xf32>
      %c1_51 = arith.constant 1 : index
      %c2_52 = arith.constant 2 : index
      %108 = memref.load %arg9[%c1_51, %c2_52] : memref<3x3xf32, #tpu.memory_space<smem>>
      %109 = vector.broadcast %108 : f32 to vector<16x1xf32>
      %110 = arith.mulf %77, %109 : vector<16x1xf32>
      %111 = arith.addf %107, %110 : vector<16x1xf32>
      %c2_53 = arith.constant 2 : index
      %c2_54 = arith.constant 2 : index
      %112 = memref.load %arg9[%c2_53, %c2_54] : memref<3x3xf32, #tpu.memory_space<smem>>
      %113 = vector.broadcast %112 : f32 to vector<16x1xf32>
      %114 = arith.mulf %82, %113 : vector<16x1xf32>
      %115 = arith.addf %111, %114 : vector<16x1xf32>
      %116 = arith.maximumf %93, %104 : vector<16x1xf32>
      %117 = arith.maximumf %116, %115 : vector<16x1xf32>
      %118 = arith.subf %93, %117 : vector<16x1xf32>
      %119 = math.exp %118 : vector<16x1xf32>
      %120 = arith.subf %104, %117 : vector<16x1xf32>
      %121 = math.exp %120 : vector<16x1xf32>
      %122 = arith.subf %115, %117 : vector<16x1xf32>
      %123 = math.exp %122 : vector<16x1xf32>
      %124 = arith.addf %119, %121 : vector<16x1xf32>
      %125 = arith.addf %124, %123 : vector<16x1xf32>
      %126 = tpu.reciprocal %125 : vector<16x1xf32> -> vector<16x1xf32>
      %127 = arith.mulf %119, %126 : vector<16x1xf32>
      %128 = arith.mulf %121, %126 : vector<16x1xf32>
      %129 = arith.mulf %123, %126 : vector<16x1xf32>
      %130 = vector.broadcast %127 : vector<16x1xf32> to vector<16x32xf32>
      %131 = arith.mulf %130, %29 : vector<16x32xf32>
      %132 = vector.broadcast %128 : vector<16x1xf32> to vector<16x32xf32>
      %133 = arith.mulf %132, %30 : vector<16x32xf32>
      %134 = arith.addf %131, %133 : vector<16x32xf32>
      %135 = vector.broadcast %129 : vector<16x1xf32> to vector<16x32xf32>
      %136 = arith.mulf %135, %31 : vector<16x32xf32>
      %137 = arith.addf %134, %136 : vector<16x32xf32>
      %cst_55 = arith.constant 3.000000e+00 : f32
      %138 = vector.broadcast %cst_55 : f32 to vector<16x32xf32>
      %139 = arith.mulf %138, %137 : vector<16x32xf32>
      %c0_56 = arith.constant 0 : index
      %c0_57 = arith.constant 0 : index
      %c0_58 = arith.constant 0 : index
      %140 = vector.load %arg10[%c0_56, %c0_57, %c0_58] : memref<1x16x32xf32, #tpu.memory_space<vmem>>, vector<1x16x32xf32>
      %141 = vector.shape_cast %140 : vector<1x16x32xf32> to vector<16x32xf32>
      %142 = vector.shape_cast %139 : vector<16x32xf32> to vector<1x16x32xf32>
      tpu.vector_store %arg10[%c0_56, %c0_57, %c0_58], %142 {strides = array<i32>} : memref<1x16x32xf32, #tpu.memory_space<vmem>>, vector<1x16x32xf32>,
    } else {
    }
    return
  }
  func.func @transform_0(%arg0: i32, %arg1: i32) -> (i32, i32, i32) {
    %c0_i32 = arith.constant 0 : i32
    %c0_i32_0 = arith.constant 0 : i32
    %c0_i32_1 = arith.constant 0 : i32
    return %arg0, %c0_i32, %c0_i32_0 : i32, i32, i32
  }
  func.func @transform_1(%arg0: i32, %arg1: i32) -> (i32, i32, i32) {
    %c0_i32 = arith.constant 0 : i32
    %c0_i32_0 = arith.constant 0 : i32
    return %arg0, %arg1, %c0_i32 : i32, i32, i32
  }
  func.func @transform_2(%arg0: i32, %arg1: i32) -> (i32, i32, i32) {
    %c0_i32 = arith.constant 0 : i32
    %c0_i32_0 = arith.constant 0 : i32
    return %arg0, %arg1, %c0_i32 : i32, i32, i32
  }
  func.func @transform_3(%arg0: i32, %arg1: i32) -> (i32, i32) {
    %c0_i32 = arith.constant 0 : i32
    %c0_i32_0 = arith.constant 0 : i32
    %c0_i32_1 = arith.constant 0 : i32
    return %c0_i32, %c0_i32_0 : i32, i32
  }
  func.func @transform_4(%arg0: i32, %arg1: i32) -> (i32, i32) {
    %c0_i32 = arith.constant 0 : i32
    %c0_i32_0 = arith.constant 0 : i32
    %c0_i32_1 = arith.constant 0 : i32
    return %c0_i32, %c0_i32_0 : i32, i32
  }
  func.func @transform_5(%arg0: i32, %arg1: i32) -> (i32, i32) {
    %c0_i32 = arith.constant 0 : i32
    %c0_i32_0 = arith.constant 0 : i32
    %c0_i32_1 = arith.constant 0 : i32
    return %c0_i32, %c0_i32_0 : i32, i32
  }
  func.func @transform_6(%arg0: i32, %arg1: i32) -> (i32, i32) {
    %c0_i32 = arith.constant 0 : i32
    %c0_i32_0 = arith.constant 0 : i32
    %c0_i32_1 = arith.constant 0 : i32
    return %c0_i32, %c0_i32_0 : i32, i32
  }
  func.func @transform_7(%arg0: i32, %arg1: i32) -> (i32, i32) {
    %c0_i32 = arith.constant 0 : i32
    %c0_i32_0 = arith.constant 0 : i32
    %c0_i32_1 = arith.constant 0 : i32
    return %c0_i32, %c0_i32_0 : i32, i32
  }
  func.func @transform_8(%arg0: i32, %arg1: i32) -> (i32, i32, i32) {
    %c0_i32 = arith.constant 0 : i32
    %c0_i32_0 = arith.constant 0 : i32
    %c0_i32_1 = arith.constant 0 : i32
    return %arg0, %c0_i32, %c0_i32_0 : i32, i32, i32
  }
}

</mosaic_0001>

<bundles_post_ra>
// kernel: tpu_custom_call.1
= control target key start
LH: loop header
LB: loop body
LE: loop exit
PB: predicated region body
PF: predicated region fallthrough
CT: control target
= control target key end

     0   :  { %s2225_s0 = inlined_call_operand.vmem [shape: f32[2,16,8], index: 0, kind: input, shape index: {}]   ;;  %s2226_s1 = inlined_call_operand.vmem [shape: f32[2,16,16], index: 1, kind: input, shape index: {}]   ;;  %s2227_s2 = inlined_call_operand.hbm [shape: f32[2,16,16], index: 2, kind: input, shape index: {}]   ;;  %s2228_s3 = inlined_call_operand.vmem [shape: f32[8,96], index: 3, kind: input, shape index: {}]   ;;  %s2229_s4 = inlined_call_operand.hbm [shape: f32[32,32], index: 4, kind: input, shape index: {}]   ;;  %s2230_s5 = inlined_call_operand.hbm [shape: f32[32,32], index: 5, kind: input, shape index: {}]   ;;  %s2231_s6 = inlined_call_operand.hbm [shape: f32[32,32], index: 6, kind: input, shape index: {}]   ;;  %s2232_s7 = inlined_call_operand.vmem [shape: f32[3,3], index: 7, kind: input, shape index: {}]   ;;  %s2233_s8 = inlined_call_operand.hbm [shape: f32[2,16,32], index: 8, kind: output, shape index: {}]  }
   0x1   :  { %2240 = sst [smem:[#allocation25_spill]] %s2225_s0 }
   0x2   :  { %2241 = sst [smem:[#allocation26_spill]] %s2226_s1 }
   0x3   :  { %2242 = sst [smem:[#allocation27_spill]] %s2227_s2 }
   0x4   :  { %2243 = sst [smem:[#allocation28_spill]] %s2228_s3 }
   0x5   :  { %2244 = sst [smem:[#allocation29_spill]] %s2229_s4 }
   0x6   :  { %2245 = sst [smem:[#allocation30_spill]] %s2230_s5 }
   0x7   :  { %2246 = sst [smem:[#allocation31_spill]] %s2231_s6 }
   0x8   :  { %2247 = sst [smem:[#allocation32_spill]] %s2232_s7 }
   0x9   :  { %2248 = sst [smem:[#allocation33_spill]] %s2233_s8 }
   0xa   :  { %13 = vsyncpa [#allocation5], 0 }
   0xb   :  { %15 = vsyncpa [#allocation5 + $0x1], 0 }
   0xc   :  { %16 = vsyncpa [#allocation9], 0 }
   0xd   :  { %17 = vsyncpa [#allocation12], 0 }
   0xe   :  { %18 = vsyncpa [#allocation7], 0 }
   0xf   :  { %19 = vsyncpa [#allocation6], 0 }
  0x10   :  { %21 = vsyncpa [#allocation6 + $0x1], 0  ;;  %s1798_s27 = smov 0   ;;  %s1800_s28 = smov 0  }
  0x11   :  { %s1802_s29 = smov 0   ;;  %s1804_s30 = smov 0  }
  0x12   :  { %s1806_s9 = smov 0   ;;  %s1808_s10 = smov 0  }
  0x13   :  { %s1810_s11 = smov 0   ;;  %s1812_s12 = smov 0  }
  0x14   :  { %s1814_s13 = smov 0   ;;  %s1816_s14 = smov 0  }
  0x15   :  { %s1818_s15 = smov 0  }
  0x16 LB: > { %2249 = sst [smem:[#allocation20_spill]] %s1728_s13  ;;  %s1205_s16 = sadd.s32 4294967295, %s1736_s15   ;;  %s1736_s15 = sphi %s1818_s15, %s27_s15   ;;  %s1732_s14 = sphi %s1816_s14, %s2283_s14   ;;  %s1728_s13 = sphi %s1814_s13, %s2282_s13   ;;  %s1724_s12 = sphi %s1812_s12, %s2281_s12   ;;  %s1720_s11 = sphi %s1810_s11, %s2280_s11   ;;  %s1716_s10 = sphi %s1808_s10, %s2289_s10   ;;  %s1712_s9 = sphi %s1806_s9, %s2288_s9   ;;  %s1708_s30 = sphi %s1804_s30, %s2287_s30   ;;  %s1704_s29 = sphi %s1802_s29, %s2286_s29   ;;  %s1700_s28 = sphi %s1800_s28, %s2285_s28   ;;  %s1696_s27 = sphi %s1798_s27, %s2284_s27  }
  0x17   : > { %2250 = sst [smem:[#allocation21_spill]] %s1732_s14  ;;  %p1207_p0 = scmp.ge.s32.totalorder %s1736_s15, 1 }
  0x18   : > { %p1855_p1 = scmp.eq.s32.totalorder %s1205_s16, 0  ;;  %p1859_p2 = scmp.eq.s32.totalorder %s1205_s16, 3 }
  0x19   : > { %p257_p3 = scmp.lt.s32.totalorder %s1736_s15, 5  ;;  %s2253_s4 = sld [smem:[#allocation29_spill]] }
  0x1a   : > { %s1738_s23 = smov [#allocation8]   ;;  %s2256_s5 = sld [smem:[#allocation30_spill]] }
  0x1b   : > { %p1867_p4 = pnand %p1207_p0, %p257_p3  ;;  %s273_s24 = sshll.u32 %s1738_s23, 4  ;;  %s274_s24 = int_to_ptr.vmem [resolvable:$true] %s273_s24 }
  0x1c   : > { %s1739_s20 = smov [#allocation10]   ;;  %s1740_s23 = smov 128  }
  0x1d   : > { %p1286_p5 = pneg %p1867_p4  ;;  %s1741_s8 = smov 8  }
  0x1e   : > { %s2257_s6 = sld [smem:[#allocation31_spill]]  ;;  %s1742_s16 = smov [#allocation11]  }
  0x1f   : > { %s271_s21 = sshll.u32 %s2253_s4, 4  ;;  %p1875_p6 = pnand %p1286_p5, %p1855_p1  ;;  %s272_s21 = int_to_ptr.hbm [resolvable:$true] %s271_s21 }
  0x20   : > { %s285_s19 = sshll.u32 %s2256_s5, 4  ;;  %s287_s4 = sshll.u32 %s1739_s20, 4  ;;  %s286_s19 = int_to_ptr.hbm [resolvable:$true] %s285_s19  ;;  %s288_s4 = int_to_ptr.vmem [resolvable:$true] %s287_s4 }
  0x21   : > { %1289 = dma.hbm_to_vmem [thread:$0]  (!%p1875_p6), %s272_s21, 512, %s274_s24, [#allocation9], %s1740_s23, %s1740_s23, %s1741_s8  }
  0x22   : > { %1292 = dma.hbm_to_vmem [thread:$0]  (!%p1875_p6), %s286_s19, 512, %s288_s4, [#allocation9], %s1740_s23, %s1740_s23, %s1741_s8  }
  0x23   : > { %s301_s20 = sshll.u32 %s1742_s16, 4  ;;  %s2258_s7 = sld [smem:[#allocation32_spill]]  ;;  %s302_s20 = int_to_ptr.vmem [resolvable:$true] %s301_s20 }
  0x24   : > { %s299_s26 = sshll.u32 %s2257_s6, 4  ;;  %s1743_s1 = smov [#allocation13]   ;;  %s300_s26 = int_to_ptr.hbm [resolvable:$true] %s299_s26 }
  0x25   : > { %1295 = dma.hbm_to_vmem [thread:$0]  (!%p1875_p6), %s300_s26, 512, %s302_s20, [#allocation12], %s1740_s23, %s1740_s23, %s1741_s8  }
  0x26   : > { %s1206_s3 = sadd.s32 4294967294, %s1736_s15   ;;  %s36_s4 = sadd.s32 1, %s1728_s13 }
  0x27   : > { %s39_s24 = sadd.s32 1, %s1732_s14  ;;  %p37_p7 = scmp.ge.s32.totalorder %s36_s4, 2 }
  0x28   : > { %s102_s0 = sadd.s32 1, %s1716_s10  ;;  %p109_p8 = scmp.ne.s32.totalorder %s1716_s10, %s1712_s9 }
  0x29   : > { %s314_s21 = sshll.u32 %s2258_s7, 4  ;;  %p110_p9 = scmp.eq.s32.totalorder %s1736_s15, 0  ;;  %s315_s21 = int_to_ptr.vmem [resolvable:$true] %s314_s21 }
  0x2a   : > { %1298 = dma.vmem_to_smem (!%p1875_p6), %s315_s21, 64, %s1743_s1, [#allocation7]  }
  0x2b   : > { %s2291_s4 = smov (%p37_p7, %s36_s4), 0  ;;  %s2293_s24 = smov (!%p37_p7, %s39_s24), %s1732_s14 }
  0x2c   : > { %2259 = sst [smem:[#allocation22_spill]] %s2291_s4  ;;  %s98_s5 = ssub.s32 %s1728_s13, %s2291_s4 }
  0x2d   : > { %p1908_p10 = por %p110_p9, %p109_p8  ;;  %p41_p11 = scmp.ge.s32.totalorder %s2293_s24, 2 }
  0x2e   : > { %p115_p12 = scmp.ne.s32.totalorder %s1712_s9, %s1708_s30  ;;  %s233_s25 = sadd.s32 1, %s1704_s29 }
  0x2f   : > { %p243_p13 = scmp.ne.s32.totalorder %s1704_s29, %s1700_s28  ;;  %s2295_s24 = smov (%p41_p11, %s2293_s24), 0 }
  0x30   : > { %2261 = sst [smem:[#allocation23_spill]] %s2295_s24  ;;  %p1921_p0 = por %p1855_p1, %p115_p12 }
  0x31   : > { %p1927_p3 = por %p1859_p2, %p243_p13  ;;  %s97_s26 = ssub.s32 %s1732_s14, %s2295_s24 }
  0x32   : > { %p249_p5 = scmp.ne.s32.totalorder %s1700_s28, %s1696_s27  ;;  %s99_s30 = sor.u32 %s98_s5, %s97_s26 }
  0x33   : > { %p231_p6 = scmp.eq.s32.totalorder %s97_s26, 0  ;;  %p100_p7 = scmp.eq.s32.totalorder %s99_s30, 0 }
  0x34   : > { %p250_p8 = scmp.eq.s32.totalorder %s1206_s3, 3  ;;  %p1311_p11 = scmp.lt.s32.totalorder %s1736_s15, 4 }
  0x35   : > { %s1936_s16 = scalar_select %p231_p6, %s1704_s29, %s233_s25  }
  0x36   : > { %s1939_s20 = scalar_select %p100_p7, %s1716_s10, %s102_s0  }
  0x37   : > { %p1941_p9 = por %p250_p8, %p249_p5  ;;  %s344_s18 = sand.u32 1, %s1716_s10  }
  0x38   : > { %2264 = sst [smem:[#allocation24_spill]] %s1939_s20  ;;  %s1214_s1 = sshll.u32 %s1732_s14, 1 }
  0x39   : > { %s1213_s6 = sshll.u32 %s344_s18, 3  ;;  %s352_s7 = sadd.s32 %s1728_s13, %s1214_s1 }
  0x3a   : > { %s1215_s24 = sshll.u32 %s352_s7, 3  ;;  %s348_s4 = scalar_lea.vmem [#allocation4], %s1213_s6 }
  0x3b   : > { %s358_s5 = sshll.u32 %s348_s4, 4  ;;  %s2266_s2 = sld [smem:[#allocation27_spill]]  ;;  %s359_s5 = int_to_ptr.vmem [resolvable:$true] %s358_s5 }
  0x3c   : > { %p1300_p2 = pnand %p1311_p11, %p1908_p10  ;;  %s345_s0 = scalar_lea.sflag [#allocation5], %s344_s18 }
  0x3d   : > { %s369_s1 = sand.u32 (!%p1867_p4), 1, %s1712_s9  }
  0x3e   : > { %s1957_s7 = sshll.u32 (!%p1867_p4), %s369_s1, 3  ;;  %s370_s6 = scalar_lea.sflag (!%p1867_p4), [#allocation5], %s369_s1 }
  0x3f   : > { %367 = sbr.rel (%p1867_p4) target bundleno = 1442 (0x5a2), region = 52 }
  0x41   : > { %s354_s3 = scalar_lea.hbm %s2266_s2, %s1215_s24 }
  0x42   : > { %s356_s25 = sshll.u32 %s354_s3, 4  ;;  %s357_s25 = int_to_ptr.hbm [resolvable:$true] %s356_s25 }
  0x43   : > { %1302 = dma.hbm_to_vmem [thread:$0]  (!%p1300_p2), %s357_s25, 128, %s359_s5, %s345_s0  }
  0x44   : > { %1675 = dma.done.wait (%p1921_p0), %s370_s6, 128  }
  0x45   : > { %1677 = vsyncadd (%p1921_p0), %s370_s6, 4294967168 }
  0x46   : > { %1679 = dma.done.wait (%p1855_p1), [#allocation9], 1024  }
  0x47   : > { %1681 = vsyncadd (%p1855_p1), [#allocation9], 4294966272 }
  0x48   : > { %1683 = dma.done.wait (%p1855_p1), [#allocation12], 512  }
  0x49   : > { %1685 = vsyncadd (%p1855_p1), [#allocation12], 4294966784 }
  0x4a   : > { %1687 = dma.done.wait (%p1855_p1), [#allocation7], 64  }
  0x4b   : > { %1689 = vsyncadd (%p1855_p1), [#allocation7], 4294967232 }
  0x4c   : > { %399 = sfence }
  0x4d   : > { %s2238_s22 = sand.u32 1, %s1700_s28   ;;  %p441_p4 = scmp.lt.s32.totalorder %s1724_s12, 1 }
  0x4e   : > { %s1222_s24 = sshll.u32 %s2238_s22, 4  ;;  %p448_p10 = scmp.lt.s32.totalorder %s1720_s11, 1 }
  0x4f   : > { %s442_s8 = scalar_select %p441_p4, %s1724_s12, 1 }
  0x50   : > { %s449_s19 = scalar_select %p448_p10, %s1720_s11, 1 }
  0x51   : > { %s1259_s18 = sshll.u32 %s442_s8, 4  ;;  %s1225_s5 = sshll.u32 %s442_s8, 1 }
  0x52   : > { %s2267_s17 = sld [smem:[#allocation25_spill]]  ;;  %s451_s25 = sadd.s32 %s1225_s5, %s449_s19 }
  0x53   : > { %s1226_s0 = sshll.u32 %s451_s25, 3  ;;  %s2268_s4 = sld [smem:[#allocation26_spill]] }
  0x54   : > { %s1989_s14 = scalar_lea.vmem [#allocation14], %s1222_s24  ;;  %p1227_p1 = scmp.ne.s32.totalorder %s1720_s11, 0 }
  0x55   : > { %s2269_s20 = sld [smem:[#allocation28_spill]] (!%p1227_p1) }
  0x56   : > { %457 = sbr.rel (%p1227_p1) target bundleno = 221 (0xdd), region = 76 }
  0x58   : > { %s445_s3 = scalar_lea.vmem %s2267_s17, %s1259_s18 }
  0x59   : > { %s453_s2 = scalar_lea.vmem %s2268_s4, %s1226_s0 }
  0x5b   : > { %v460_v0 = vld [vmem:[%s2269_s20] sm:$0xff]  ;;  %vm461_vm0 = vcmask 64512   ;;  %v459_v2 = vld [vmem:[%s445_s3 + $0x8] sm:$0xff]  ;;  %vm491_vm1 = vcmask 785408  }
  0x5c   : > { %v458_v1 = vld [vmem:[%s445_s3] sm:$0xff]  ;;  %483 = vmatpush.msra.mxu0 %v460_v0  ;;  %1261 = vmatpush.msra.mxu1 %v460_v0 }
  0x5d   : > { %1228 = vmatmul.msk.f32.vlgmr.msra.gmra.mxu0 %vm461_vm0, %v458_v1  ;;  %1229 = vmatmul.msk.f32.vlgmr.msra.gmra.mxu1 %vm461_vm0, %v459_v2 }
  0xda   : > { %v485_v3 = vpop.f32.mrf.mxu0  ;;  %v488_v4 = vpop.f32.mrf.mxu1 }
  0xdb   : > { %492 = vst.msk [vmem:[#allocation2] sm:$0xff] %vm491_vm1, %v485_v3 }
  0xdc   : > { %493 = vst.msk [vmem:[#allocation2 + $0x8] sm:$0xff] %vm491_vm1, %v488_v4 }
  0xdd PF: > { %s1744_s13 = smov 96   ;;  %vm497_vm2 = vcmask 130048   ;;  %v496_v8 = vld [vmem:[%s453_s2] sm:$0xff]  ;;  %s2270_s20 = scalar_lea.vmem [#allocation4], %s1957_s7  ;;  %vm563_vm3 = vcmask 261120   ;;  %vm565_vm4 = vcmask 523264  }
  0xde   : > { %v522_v12 = vld [vmem:[%s2270_s20] sm:$0xff]  ;;  %s1745_s4 = smov 32   ;;  %s1232_s22 = sshll.u32 %s1720_s11, 3  ;;  %vm568_vm5 = vcmask 785408  }
  0xdf   : > { %s556_s24 = scalar_lea.vmem [#allocation2], %s1232_s22  ;;  %s567_s2 = scalar_lea.vmem [#allocation3], %s1232_s22 }
  0xe0   : > { %p1233_p12 = scmp.ne.s32.totalorder %s1720_s11, 1 }
  0xe1   : > { %s1746_s7 = smov (!%p1233_p12), 64   ;;  %s1747_s11 = smov (!%p1233_p12), 96  }
  0xe2   : > { %v494_v5 = vld [vmem:[#allocation2] sm:$0xff]  ;;  %s1749_s8 = smov (!%p1233_p12), 16   ;;  %s1750_s19 = smov (!%p1233_p12), 112  }
  0xe3   : > { %v495_v6 = vld [vmem:[#allocation2 + $0x8] sm:$0xff]  ;;  %v557_v16 = vld [vmem:[%s556_s24] sm:$0xff]  ;;  %s2037_s18 = sld [smem:[#allocation13]] (!%p1233_p12) }
  0xe4   : > { %v1420_v7 = vpack.i.bf16 %v494_v5, %v495_v6  ;;  %515 = vmatpush.msra.mxu0 %v495_v6  ;;  %v558_v18 = vmax.f32 %v557_v16, 0.0  ;;  %s2039_s5 = sld [smem:[#allocation13 + $0x1]] (!%p1233_p12) }
  0xe5   : > { %s2041_s26 = sld [smem:[#allocation13 + $0x2]] (!%p1233_p12) }
  0xe6   : > { %1421 = vrot.lane.b32.xlu0 %v1420_v7, %s1744_s13  ;;  %516 = vmatpush.msra.mxu0 %v494_v5  ;;  %s2043_s30 = sld [smem:[#allocation13 + $0x80]] (!%p1233_p12) }
  0xe7   : > { %1230 = vmatmul.msk.f32.vlgmr.msra.gmra.mxu0 %vm497_vm2, %v496_v8  ;;  %s2045_s17 = sld [smem:[#allocation13 + $0x81]] (!%p1233_p12) }
  0xe8   : > { %s2048_s3 = sld [smem:[#allocation13 + $0x100]] (!%p1233_p12) }
  0xe9   : > { %s2050_s25 = sld [smem:[#allocation13 + $0x101]] (!%p1233_p12) }
  0xea   : > { %s2054_s0 = sld [smem:[#allocation13 + $0x82]] (!%p1233_p12) }
  0xeb   : > { %s2059_s1 = sld [smem:[#allocation13 + $0x102]] (!%p1233_p12) }
 0x158   : > { %v1422_v9 = vpop.permute.xlu0 %1421 }
 0x159   : > { %v1423_v10 = vunpack.i.l.bf16 %v1422_v9  ;;  %v1424_v11 = vunpack.i.h.bf16 %v1422_v9 }
 0x15b   : > { %548 = vmatpush.msra.mxu1 %v1423_v10 }
 0x15d   : > { %549 = vmatpush.msra.mxu1 %v1424_v11 }
 0x15e   : > { %1231 = vmatmul.msk.f32.vlgmr.msra.gmra.mxu1 %vm497_vm2, %v522_v12 }
 0x164   : > { %v518_v15 = vpop.f32.mrf.mxu0 }
 0x165   : > { %v521_v17 = vmax.f32 %v518_v15, 0.0 }
 0x1db   : > { %v551_v13 = vpop.f32.mrf.mxu1 }
 0x1dc   : > { %v554_v14 = vmax.f32 %v551_v13, 0.0 }
 0x1de   : > { %560 = vrot.lane.b32.xlu0 %v554_v14, %s1745_s4 }
 0x24f   : > { %573 = sbr.rel (%p1233_p12) target bundleno = 1421 (0x58d), region = 80 }
 0x250   : > { %v561_v19 = vpop.permute.xlu0 %560 }
 0x251   : > { %v564_v20 = vsel %vm563_vm3, %v521_v17, %v561_v19 }
 0x252   : > { %v566_v21 = vsel %vm565_vm4, %v564_v20, %v558_v18 }
 0x253   : > { %569 = vst.msk [vmem:[%s567_s2] sm:$0xff] %vm568_vm5, %v566_v21 }
 0x254   : > { %v647_v24 = vld [vmem:[#allocation11 + $0x18] sm:$0xff]  ;;  %v646_v25 = vld [vmem:[#allocation11 + $0x10] sm:$0xff]  ;;  %v645_v26 = vld [vmem:[#allocation11 + $0x8] sm:$0xff]  ;;  %v1748_v40 = vmov 16.0  }
 0x255   : > { %668 = vmatpush.msra.mxu2 %v647_v24  ;;  %v644_v27 = vld [vmem:[#allocation11] sm:$0xff]  ;;  %v612_v28 = vld [vmem:[#allocation10 + $0x18] sm:$0xff]  ;;  %v611_v29 = vld [vmem:[#allocation10 + $0x10] sm:$0xff]  ;;  %1425 = vrcp.f32 %v1748_v40 }
 0x256   : > { %v579_v30 = vld [vmem:[#allocation8 + $0x18] sm:$0xff]  ;;  %633 = vmatpush.msra.mxu1 %v612_v28  ;;  %v578_v31 = vld [vmem:[#allocation8 + $0x10] sm:$0xff]  ;;  %v610_v32 = vld [vmem:[#allocation10 + $0x8] sm:$0xff] }
 0x257   : > { %669 = vmatpush.msra.mxu2 %v646_v25  ;;  %1262 = vmatpush.msra.mxu3 %v579_v30  ;;  %v609_v33 = vld [vmem:[#allocation10] sm:$0xff]  ;;  %v577_v34 = vld [vmem:[#allocation8 + $0x8] sm:$0xff] }
 0x258   : > { %598 = vmatpush.msra.mxu0 %v579_v30  ;;  %634 = vmatpush.msra.mxu1 %v611_v29  ;;  %v576_v35 = vld [vmem:[#allocation8] sm:$0xff] }
 0x259   : > { %670 = vmatpush.msra.mxu2 %v645_v26  ;;  %1263 = vmatpush.msra.mxu3 %v578_v31 }
 0x25a   : > { %v2002_v22 = vld [vmem:[#allocation3] sm:$0xff]  ;;  %v2004_v23 = vld [vmem:[#allocation3 + $0x8] sm:$0xff]  ;;  %599 = vmatpush.msra.mxu0 %v578_v31  ;;  %635 = vmatpush.msra.mxu1 %v610_v32 }
 0x25b   : > { %648 = vrot.lane.b32.xlu0 %v2002_v22, %s1746_s7  ;;  %650 = vrot.lane.b32.xlu1 %v2004_v23, %s1746_s7  ;;  %v1426_v46 = vpop.eup %1425 }
 0x25c   : > { %671 = vmatpush.msra.mxu2 %v644_v27  ;;  %636 = vmatpush.msra.mxu1 %v609_v33  ;;  %v689_v49 = vmul.f32 16.0, %v1426_v46  ;;  %vm693_vm6 = vweird.f32 %v1426_v46 }
 0x25d   : > { %1264 = vmatpush.msra.mxu3 %v577_v34  ;;  %600 = vmatpush.msra.mxu0 %v577_v34 }
 0x25e   : > { %v690_v54 = vsub.f32 1.0, %v689_v49 }
 0x25f   : > { %1265 = vmatpush.msra.mxu3 %v576_v35  ;;  %601 = vmatpush.msra.mxu0 %v576_v35 }
 0x260   : > { %1235 = vmatmul.msk.f32.vlgmr.msra.gmra.mxu3 %vm563_vm3, %v2004_v23  ;;  %1234 = vmatmul.msk.f32.vlgmr.msra.gmra.mxu0 %vm563_vm3, %v2002_v22  ;;  %v691_v62 = vmul.f32 %v1426_v46, %v690_v54 }
 0x262   : > { %v692_v4 = vadd.f32 %v1426_v46, %v691_v62 }
 0x263   : > { %613 = vrot.lane.b32.xlu0 %v2002_v22, %s1747_s11  ;;  %615 = vrot.lane.b32.xlu1 %v2004_v23, %s1747_s11 }
 0x264   : > { %v694_v10 = vsel %vm693_vm6, %v1426_v46, %v692_v4 }
 0x2cd   : > { %v649_v36 = vpop.permute.xlu0 %648  ;;  %v651_v37 = vpop.permute.xlu1 %650 }
 0x2ce   : > { %1238 = vmatmul.msk.f32.vlgmr.msra.gmra.mxu2 %vm563_vm3, %v649_v36 }
 0x2d5   : > { %v614_v38 = vpop.permute.xlu0 %613  ;;  %v616_v39 = vpop.permute.xlu1 %615 }
 0x2d6   : > { %1236 = vmatmul.msk.f32.vlgmr.msra.gmra.mxu1 %vm563_vm3, %v614_v38  ;;  %1239 = vmatmul.msk.f32.gmra.mxu2 %vm563_vm3, %v651_v37 }
 0x2dd   : > { %v603_v41 = vpop.f32.mrf.mxu0 }
 0x2de   : > { %1237 = vmatmul.msk.f32.gmra.mxu1 %vm563_vm3, %v616_v39  ;;  %v679_v44 = vsel %vm497_vm2, %v603_v41, 0.0 }
 0x2e3   : > { %v606_v42 = vpop.f32.mrf.mxu3 }
 0x2e4   : > { %v680_v45 = vsel %vm497_vm2, %v606_v42, 0.0 }
 0x2e5   : > { %v681_v48 = vadd.f32 %v680_v45, %v679_v44 }
 0x2e7   : > { %v682_v51 = vrot.slane %v681_v48, 4 }
 0x2e9   : > { %v683_v61 = vadd.f32 %v682_v51, %v681_v48 }
 0x2eb   : > { %v684_v3 = vrot.slane %v683_v61, 2 }
 0x2ed   : > { %v685_v8 = vadd.f32 %v684_v3, %v683_v61  ;;  %v895_v3 = vstv %s2043_s30 }
 0x2ef   : > { %v686_v13 = vrot.slane %v685_v8, 1 }
 0x2f1   : > { %v687_v17 = vadd.f32 %v686_v13, %v685_v8  ;;  %v911_v8 = vstv %s2045_s17  ;;  %v901_v13 = vstv %s2048_s3 }
 0x2f3   : > { %v695_v18 = vmul.f32 %v694_v10, %v687_v17 }
 0x351   : > { %v673_v43 = vpop.f32.mrf.mxu2 }
 0x352   : > { %v706_v52 = vsel %vm497_vm2, %v673_v43, 0.0 }
 0x353   : > { %v638_v47 = vpop.f32.mrf.mxu1 }
 0x354   : > { %v696_v57 = vsel %vm497_vm2, %v638_v47, 0.0 }
 0x359   : > { %v676_v50 = vpop.f32.mrf.mxu2 }
 0x35a   : > { %v707_v53 = vsel %vm497_vm2, %v676_v50, 0.0 }
 0x35b   : > { %v708_v55 = vadd.f32 %v707_v53, %v706_v52  ;;  %v641_v56 = vpop.f32.mrf.mxu1 }
 0x35c   : > { %v697_v58 = vsel %vm497_vm2, %v641_v56, 0.0 }
 0x35d   : > { %v709_v59 = vrot.slane %v708_v55, 4  ;;  %v698_v60 = vadd.f32 %v697_v58, %v696_v57 }
 0x35f   : > { %v710_v63 = vadd.f32 %v709_v59, %v708_v55  ;;  %v699_v0 = vrot.slane %v698_v60, 4 }
 0x361   : > { %v711_v1 = vrot.slane %v710_v63, 2  ;;  %v700_v2 = vadd.f32 %v699_v0, %v698_v60 }
 0x363   : > { %v701_v5 = vrot.slane %v700_v2, 2  ;;  %v712_v6 = vadd.f32 %v711_v1, %v710_v63  ;;  %v891_v1 = vstv %s2037_s18 }
 0x365   : > { %v702_v7 = vadd.f32 %v701_v5, %v700_v2  ;;  %v713_v9 = vrot.slane %v712_v6, 1  ;;  %v907_v2 = vstv %s2039_s5 }
 0x367   : > { %v703_v11 = vrot.slane %v702_v7, 1  ;;  %v714_v12 = vadd.f32 %v713_v9, %v712_v6 }
 0x369   : > { %v715_v14 = vmul.f32 %v714_v12, %v694_v10  ;;  %v704_v15 = vadd.f32 %v703_v11, %v702_v7  ;;  %v923_v11 = vstv %s2041_s26 }
 0x36b   : > { %717 = vrot.lane.b32.xlu2 %v715_v14, %s1749_s8  ;;  %v705_v16 = vmul.f32 %v704_v15, %v694_v10 }
 0x36d   : > { %757 = vrot.lane.b32.xlu0 %v705_v16, %s1749_s8 }
 0x373   : > { %737 = vrot.lane.b32.xlu2 %v695_v18, %s1749_s8  ;;  %v917_v18 = vstv %s2050_s25 }
 0x3c5   : > { %v718_v19 = vpop.permute.xlu2 %717 }
 0x3c6   : > { %v720_v20 = vmul.f32 %v718_v19, %v603_v41  ;;  %v721_v21 = vmul.f32 %v718_v19, %v606_v42  ;;  %v927_v19 = vstv %s2054_s0 }
 0x3c8   : > { %724 = vrot.lane.b32.xlu1 %v720_v20, %s1750_s19  ;;  %726 = vrot.lane.b32.xlu2 %v721_v21, %s1750_s19 }
 0x3cd   : > { %v738_v24 = vpop.permute.xlu2 %737 }
 0x3ce   : > { %v740_v25 = vmul.f32 %v738_v24, %v638_v47  ;;  %v741_v26 = vmul.f32 %v738_v24, %v641_v56 }
 0x3d0   : > { %746 = vrot.lane.b32.xlu1 %v741_v26, %s1750_s19  ;;  %744 = vrot.lane.b32.xlu0 %v740_v25, %s1750_s19 }
 0x3df   : > { %v758_v27 = vpop.permute.xlu0 %757 }
 0x3e0   : > { %v760_v28 = vmul.f32 %v758_v27, %v673_v43  ;;  %v761_v29 = vmul.f32 %v758_v27, %v676_v50 }
 0x3e2   : > { %764 = vrot.lane.b32.xlu2 %v760_v28, %s1750_s19  ;;  %766 = vrot.lane.b32.xlu0 %v761_v29, %s1750_s19  ;;  %v933_v28 = vstv %s2059_s1 }
 0x422   : > { %v727_v30 = vpop.permute.xlu2 %726 }
 0x423   : > { %v733_v39 = vsel %vm497_vm2, %v727_v30, 0.0 }
 0x43a   : > { %v725_v31 = vpop.permute.xlu1 %724 }
 0x43b   : > { %v730_v32 = vsel %vm497_vm2, %v725_v31, 0.0 }
 0x43c   : > { %731 = vadd.xlane.f32.xlu1 %v730_v32  ;;  %v765_v33 = vpop.permute.xlu2 %764 }
 0x43d   : > { %v770_v38 = vsel %vm497_vm2, %v765_v33, 0.0 }
 0x442   : > { %v747_v34 = vpop.permute.xlu1 %746  ;;  %v745_v35 = vpop.permute.xlu0 %744 }
 0x443   : > { %v753_v36 = vsel %vm497_vm2, %v747_v34, 0.0  ;;  %v750_v37 = vsel %vm497_vm2, %v745_v35, 0.0 }
 0x444   : > { %754 = vadd.xlane.f32.xlu2 %v753_v36  ;;  %751 = vadd.xlane.f32.xlu0 %v750_v37 }
 0x445   : > { %771 = vadd.xlane.f32.xlu1 %v770_v38 }
 0x44c   : > { %734 = vadd.xlane.f32.xlu2 %v733_v39 }
 0x454   : > { %v767_v40 = vpop.permute.xlu0 %766 }
 0x455   : > { %v773_v41 = vsel %vm497_vm2, %v767_v40, 0.0 }
 0x456   : > { %774 = vadd.xlane.f32.xlu2 %v773_v41 }
 0x4af   : > { %v732_v42 = vpop.xlane.xlu1 %731 }
 0x4b0   : > { %v1240_v43 = vmul.f32 -1.442695, %v732_v42 }
 0x4b2   : > { %1427 = vpow2.f32 %v1240_v43 }
 0x4b7   : > { %v752_v44 = vpop.xlane.xlu0 %751  ;;  %v755_v45 = vpop.xlane.xlu2 %754 }
 0x4b8   : > { %v1428_v46 = vpop.eup %1427  ;;  %v1242_v47 = vmul.f32 -1.442695, %v752_v44  ;;  %v772_v48 = vpop.xlane.xlu1 %771  ;;  %v1243_v51 = vmul.f32 -1.442695, %v755_v45 }
 0x4b9   : > { %v2034_v49 = vadd.f32 1.0, %v1428_v46  ;;  %v1244_v50 = vmul.f32 -1.442695, %v772_v48 }
 0x4ba   : > { %1429 = vpow2.f32 %v1242_v47 }
 0x4bb   : > { %1431 = vrcp.f32 %v2034_v49  ;;  %v795_v7 = vand.u32 2147483648, %v2034_v49  ;;  %vm789_vm8 = vweird.f32 %v2034_v49  ;;  %v793_v12 = vand.u32 2147483647, %v2034_v49 }
 0x4bc   : > { %1433 = vpow2.f32 %v1244_v50 }
 0x4bd   : > { %1435 = vpow2.f32 %v1243_v51  ;;  %v796_v26 = vor.u32 1.1754944e-38, %v795_v7  ;;  %vm794_vm11 = vcmp.eq.f32.partialorder %v793_v12, 8.507059e+37 }
 0x4bf   : > { %v735_v52 = vpop.xlane.xlu2 %734 }
 0x4c0   : > { %v1430_v53 = vpop.eup %1429  ;;  %v1241_v54 = vmul.f32 -1.442695, %v735_v52 }
 0x4c1   : > { %v1432_v55 = vpop.eup %1431  ;;  %v820_v56 = vadd.f32 1.0, %v1430_v53 }
 0x4c2   : > { %v1434_v57 = vpop.eup %1433  ;;  %v785_v58 = vmul.f32 %v1432_v55, %v2034_v49  ;;  %1437 = vpow2.f32 %v1241_v54  ;;  %vm790_vm7 = vweird.f32 %v1432_v55 }
 0x4c3   : > { %v1436_v59 = vpop.eup %1435  ;;  %1439 = vrcp.f32 %v820_v56  ;;  %v2052_v61 = vadd.f32 1.0, %v1434_v57  ;;  %vm2074_vm9 = vmor %vm789_vm8, %vm790_vm7  ;;  %v831_v17 = vand.u32 2147483647, %v820_v56  ;;  %v833_v21 = vand.u32 2147483648, %v820_v56 }
 0x4c4   : > { %v786_v60 = vsub.f32 1.0, %v785_v58  ;;  %v2056_v62 = vadd.f32 1.0, %v1436_v59  ;;  %vm827_vm12 = vweird.f32 %v820_v56 }
 0x4c5   : > { %1441 = vrcp.f32 %v2052_v61  ;;  %v871_v31 = vand.u32 2147483648, %v2052_v61  ;;  %vm832_vm13 = vcmp.eq.f32.partialorder %v831_v17, 8.507059e+37  ;;  %v834_v35 = vor.u32 1.1754944e-38, %v833_v21 }
 0x4c6   : > { %v787_v63 = vmul.f32 %v1432_v55, %v786_v60  ;;  %1443 = vrcp.f32 %v2056_v62  ;;  %v869_v37 = vand.u32 2147483647, %v2052_v61  ;;  %vm865_vm0 = vweird.f32 %v2052_v61 }
 0x4c7   : > { %v872_v44 = vor.u32 1.1754944e-38, %v871_v31  ;;  %v848_v17 = vand.u32 2147483648, %v2056_v62  ;;  %vm842_vm8 = vweird.f32 %v2056_v62 }
 0x4c8   : > { %v1438_v0 = vpop.eup %1437  ;;  %v788_v5 = vadd.f32 %v1432_v55, %v787_v63  ;;  %vm870_vm2 = vcmp.eq.f32.partialorder %v869_v37, 8.507059e+37 }
 0x4c9   : > { %v1440_v4 = vpop.eup %1439  ;;  %v2065_v6 = vadd.f32 1.0, %v1438_v0  ;;  %v775_v10 = vpop.xlane.xlu2 %774  ;;  %v849_v37 = vor.u32 1.1754944e-38, %v848_v17 }
 0x4ca   : > { %v823_v9 = vmul.f32 %v1440_v4, %v820_v56  ;;  %v792_v20 = vsel %vm2074_vm9, %v1432_v55, %v788_v5  ;;  %v1245_v25 = vmul.f32 -1.442695, %v775_v10  ;;  %vm828_vm10 = vweird.f32 %v1440_v4 }
 0x4cb   : > { %1445 = vrcp.f32 %v2065_v6  ;;  %v1442_v14 = vpop.eup %1441  ;;  %v797_v32 = vsel %vm794_vm11, %v796_v26, %v792_v20  ;;  %vm829_vm14 = vmor %vm827_vm12, %vm828_vm10  ;;  %v810_v12 = vand.u32 2147483648, %v2065_v6  ;;  %vm804_vm6 = vweird.f32 %v2065_v6 }
 0x4cc   : > { %v824_v16 = vsub.f32 1.0, %v823_v9  ;;  %v861_v24 = vmul.f32 %v1442_v14, %v2052_v61  ;;  %v2084_v29 = vpop.eup %1443  ;;  %1447 = vpow2.f32 %v1245_v25  ;;  %vm866_vm15 = vweird.f32 %v1442_v14 }
 0x4cd   : > { %v838_v39 = vmul.f32 %v2084_v29, %v2056_v62  ;;  %v892_v41 = vmul.f32 %v891_v1, %v797_v32  ;;  %v908_v45 = vmul.f32 %v907_v2, %v797_v32  ;;  %vm867_vm1 = vmor %vm865_vm0, %vm866_vm15  ;;  %v924_v51 = vmul.f32 %v923_v11, %v797_v32 }
 0x4ce   : > { %v825_v27 = vmul.f32 %v1440_v4, %v824_v16  ;;  %v862_v30 = vsub.f32 1.0, %v861_v24  ;;  %vm843_vm5 = vweird.f32 %v2084_v29  ;;  %v808_v16 = vand.u32 2147483647, %v2065_v6 }
 0x4cf   : > { %v839_v56 = vsub.f32 1.0, %v838_v39  ;;  %v846_v26 = vand.u32 2147483647, %v2056_v62  ;;  %vm2132_vm9 = vmor %vm842_vm8, %vm843_vm5  ;;  %v811_v31 = vor.u32 1.1754944e-38, %v810_v12 }
 0x4d0   : > { %v826_v33 = vadd.f32 %v1440_v4, %v825_v27  ;;  %v863_v36 = vmul.f32 %v1442_v14, %v862_v30  ;;  %vm809_vm10 = vcmp.eq.f32.partialorder %v808_v16, 8.507059e+37 }
 0x4d1   : > { %v2087_v34 = vpop.eup %1445  ;;  %v840_v5 = vmul.f32 %v2084_v29, %v839_v56  ;;  %vm847_vm11 = vcmp.eq.f32.partialorder %v846_v26, 8.507059e+37 }
 0x4d2   : > { %v830_v38 = vsel %vm829_vm14, %v1440_v4, %v826_v33  ;;  %v800_v40 = vmul.f32 %v2087_v34, %v2065_v6  ;;  %v864_v43 = vadd.f32 %v1442_v14, %v863_v36  ;;  %v1448_v49 = vpop.eup %1447  ;;  %vm805_vm4 = vweird.f32 %v2087_v34 }
 0x4d3   : > { %v835_v42 = vsel %vm832_vm13, %v834_v35, %v830_v38  ;;  %v859_v60 = vadd.f32 1.0, %v1448_v49  ;;  %v841_v15 = vadd.f32 %v2084_v29, %v840_v5  ;;  %vm2123_vm7 = vmor %vm804_vm6, %vm805_vm4 }
 0x4d4   : > { %v896_v46 = vmul.f32 %v895_v3, %v835_v42  ;;  %v912_v47 = vmul.f32 %v911_v8, %v835_v42  ;;  %v801_v48 = vsub.f32 1.0, %v800_v40  ;;  %v868_v50 = vsel %vm867_vm1, %v1442_v14, %v864_v43 }
 0x4d5   : > { %v928_v52 = vmul.f32 %v927_v19, %v835_v42  ;;  %v873_v55 = vsel %vm870_vm2, %v872_v44, %v868_v50  ;;  %1449 = vrcp.f32 %v859_v60  ;;  %v845_v36 = vsel %vm2132_vm9, %v2084_v29, %v841_v15 }
 0x4d6   : > { %v898_v53 = vadd.f32 %v896_v46, %v892_v41  ;;  %v914_v54 = vadd.f32 %v912_v47, %v908_v45  ;;  %v902_v57 = vmul.f32 %v901_v13, %v873_v55  ;;  %v918_v58 = vmul.f32 %v917_v18, %v873_v55 }
 0x4d7   : > { %v802_v59 = vmul.f32 %v2087_v34, %v801_v48  ;;  %v930_v61 = vadd.f32 %v928_v52, %v924_v51  ;;  %v934_v4 = vmul.f32 %v933_v28, %v873_v55  ;;  %v886_v39 = vand.u32 2147483648, %v859_v60 }
 0x4d8   : > { %v904_v63 = vadd.f32 %v902_v57, %v898_v53  ;;  %v920_v0 = vadd.f32 %v918_v58, %v914_v54  ;;  %v850_v40 = vsel %vm847_vm11, %v849_v37, %v845_v36  ;;  %v884_v42 = vand.u32 2147483647, %v859_v60 }
 0x4d9   : > { %v936_v7 = vadd.f32 %v934_v4, %v930_v61  ;;  %v803_v10 = vadd.f32 %v2087_v34, %v802_v59  ;;  %vm880_vm13 = vweird.f32 %v859_v60  ;;  %v897_v45 = vmul.f32 %v895_v3, %v850_v40 }
 0x4da   : > { %v938_v9 = vmax.f32 %v904_v63, %v920_v0  ;;  %v887_v46 = vor.u32 1.1754944e-38, %v886_v39  ;;  %v913_v48 = vmul.f32 %v911_v8, %v850_v40  ;;  %vm885_vm15 = vcmp.eq.f32.partialorder %v884_v42, 8.507059e+37 }
 0x4db   : > { %v1450_v25 = vpop.eup %1449  ;;  %v807_v27 = vsel %vm2123_vm7, %v2087_v34, %v803_v10  ;;  %v929_v56 = vmul.f32 %v927_v19, %v850_v40 }
 0x4dc   : > { %v940_v14 = vmax.f32 %v938_v9, %v936_v7  ;;  %v876_v32 = vmul.f32 %v1450_v25, %v859_v60  ;;  %v812_v34 = vsel %vm809_vm10, %v811_v31, %v807_v27  ;;  %vm881_vm12 = vweird.f32 %v1450_v25 }
 0x4dd   : > { %v893_v43 = vmul.f32 %v891_v1, %v812_v34  ;;  %v909_v29 = vmul.f32 %v907_v2, %v812_v34  ;;  %vm882_vm14 = vmor %vm880_vm13, %vm881_vm12  ;;  %v925_v52 = vmul.f32 %v923_v11, %v812_v34 }
 0x4de   : > { %v942_v21 = vsub.f32 %v904_v63, %v940_v14  ;;  %v948_v24 = vsub.f32 %v920_v0, %v940_v14  ;;  %v954_v30 = vsub.f32 %v936_v7, %v940_v14  ;;  %v877_v38 = vsub.f32 1.0, %v876_v32 }
 0x4df   : > { %v899_v1 = vadd.f32 %v897_v45, %v893_v43  ;;  %v915_v2 = vadd.f32 %v913_v48, %v909_v29  ;;  %v931_v60 = vadd.f32 %v929_v56, %v925_v52 }
 0x4e0   : > { %v944_v33 = vmul.f32 1.442695, %v942_v21  ;;  %v950_v35 = vmul.f32 1.442695, %v948_v24  ;;  %v956_v62 = vmul.f32 1.442695, %v954_v30  ;;  %v878_v41 = vmul.f32 %v1450_v25, %v877_v38 }
 0x4e2   : > { %1451 = vpow2.f32 %v944_v33  ;;  %v879_v44 = vadd.f32 %v1450_v25, %v878_v41 }
 0x4e3   : > { %1453 = vpow2.f32 %v950_v35 }
 0x4e4   : > { %1455 = vpow2.f32 %v956_v62  ;;  %v883_v49 = vsel %vm882_vm14, %v1450_v25, %v879_v44 }
 0x4e5   : > { %v888_v51 = vsel %vm885_vm15, %v887_v46, %v883_v49 }
 0x4e6   : > { %v903_v53 = vmul.f32 %v901_v13, %v888_v51  ;;  %v919_v54 = vmul.f32 %v917_v18, %v888_v51  ;;  %v935_v57 = vmul.f32 %v933_v28, %v888_v51 }
 0x4e8   : > { %v1452_v47 = vpop.eup %1451  ;;  %v905_v8 = vadd.f32 %v903_v53, %v899_v1  ;;  %v921_v59 = vadd.f32 %v919_v54, %v915_v2  ;;  %v937_v61 = vadd.f32 %v935_v57, %v931_v60 }
 0x4e9   : > { %v1454_v50 = vpop.eup %1453 }
 0x4ea   : > { %v960_v3 = vadd.f32 %v1454_v50, %v1452_v47  ;;  %v1456_v55 = vpop.eup %1455  ;;  %v939_v63 = vmax.f32 %v905_v8, %v921_v59 }
 0x4ec   : > { %v962_v58 = vadd.f32 %v1456_v55, %v960_v3  ;;  %v941_v0 = vmax.f32 %v939_v63, %v937_v61 }
 0x4ee   : > { %1457 = vrcp.f32 %v962_v58  ;;  %v943_v11 = vsub.f32 %v905_v8, %v941_v0  ;;  %v949_v4 = vsub.f32 %v921_v59, %v941_v0  ;;  %v955_v5 = vsub.f32 %v937_v61, %v941_v0 }
 0x4ef   : > { %v975_v19 = vand.u32 2147483648, %v962_v58  ;;  %v973_v14 = vand.u32 2147483647, %v962_v58  ;;  %vm969_vm1 = vweird.f32 %v962_v58 }
 0x4f0   : > { %v946_v18 = vmul.f32 1.442695, %v943_v11  ;;  %v952_v9 = vmul.f32 1.442695, %v949_v4  ;;  %v958_v10 = vmul.f32 1.442695, %v955_v5 }
 0x4f1   : > { %v976_v16 = vor.u32 1.1754944e-38, %v975_v19  ;;  %vm974_vm4 = vcmp.eq.f32.partialorder %v973_v14, 8.507059e+37 }
 0x4f2   : > { %1459 = vpow2.f32 %v946_v18 }
 0x4f3   : > { %1461 = vpow2.f32 %v952_v9 }
 0x4f4   : > { %v1458_v13 = vpop.eup %1457  ;;  %1463 = vpow2.f32 %v958_v10 }
 0x4f5   : > { %v965_v7 = vmul.f32 %v1458_v13, %v962_v58  ;;  %vm970_vm0 = vweird.f32 %v1458_v13 }
 0x4f6   : > { %vm971_vm2 = vmor %vm969_vm1, %vm970_vm0 }
 0x4f7   : > { %v966_v12 = vsub.f32 1.0, %v965_v7 }
 0x4f8   : > { %v1460_v17 = vpop.eup %1459 }
 0x4f9   : > { %v967_v28 = vmul.f32 %v1458_v13, %v966_v12  ;;  %v1462_v21 = vpop.eup %1461 }
 0x4fa   : > { %v961_v27 = vadd.f32 %v1462_v21, %v1460_v17  ;;  %v1464_v6 = vpop.eup %1463 }
 0x4fb   : > { %v968_v15 = vadd.f32 %v1458_v13, %v967_v28 }
 0x4fc   : > { %v963_v33 = vadd.f32 %v1464_v6, %v961_v27 }
 0x4fd   : > { %v972_v20 = vsel %vm971_vm2, %v1458_v13, %v968_v15 }
 0x4fe   : > { %v977_v24 = vsel %vm974_vm4, %v976_v16, %v972_v20  ;;  %1465 = vrcp.f32 %v963_v33  ;;  %v989_v37 = vand.u32 2147483648, %v963_v33  ;;  %v987_v38 = vand.u32 2147483647, %v963_v33 }
 0x4ff   : > { %v996_v25 = vmul.f32 %v1456_v55, %v977_v24  ;;  %v994_v26 = vmul.f32 %v1454_v50, %v977_v24  ;;  %v992_v30 = vmul.f32 %v1452_v47, %v977_v24  ;;  %vm983_vm6 = vweird.f32 %v963_v33 }
 0x500   : > { %v990_v40 = vor.u32 1.1754944e-38, %v989_v37  ;;  %vm988_vm8 = vcmp.eq.f32.partialorder %v987_v38, 8.507059e+37 }
 0x501   : > { %v1012_v31 = vmul.f32 %v996_v25, %v2002_v22  ;;  %v1000_v32 = vmul.f32 %v994_v26, %v2002_v22  ;;  %v998_v47 = vmul.f32 %v992_v30, %v2002_v22 }
 0x503   : > { %1016 = vrot.lane.b32.xlu2 %v1012_v31, %s1746_s7  ;;  %1004 = vrot.lane.b32.xlu0 %v1000_v32, %s1747_s11 }
 0x504   : > { %v1466_v35 = vpop.eup %1465 }
 0x505   : > { %v979_v36 = vmul.f32 %v1466_v35, %v963_v33  ;;  %vm984_vm5 = vweird.f32 %v1466_v35 }
 0x506   : > { %vm985_vm7 = vmor %vm983_vm6, %vm984_vm5 }
 0x507   : > { %v980_v62 = vsub.f32 1.0, %v979_v36 }
 0x509   : > { %v981_v34 = vmul.f32 %v1466_v35, %v980_v62 }
 0x50b   : > { %v982_v39 = vadd.f32 %v1466_v35, %v981_v34 }
 0x50d   : > { %v986_v41 = vsel %vm985_vm7, %v1466_v35, %v982_v39 }
 0x50e   : > { %v991_v42 = vsel %vm988_vm8, %v990_v40, %v986_v41 }
 0x50f   : > { %v997_v43 = vmul.f32 %v1464_v6, %v991_v42  ;;  %v995_v29 = vmul.f32 %v1462_v21, %v991_v42  ;;  %v993_v44 = vmul.f32 %v1460_v17, %v991_v42 }
 0x511   : > { %v1013_v45 = vmul.f32 %v997_v43, %v2004_v23  ;;  %v1001_v46 = vmul.f32 %v995_v29, %v2004_v23  ;;  %v999_v52 = vmul.f32 %v993_v44, %v2004_v23 }
 0x513   : > { %1018 = vrot.lane.b32.xlu0 %v1013_v45, %s1746_s7  ;;  %1006 = vrot.lane.b32.xlu1 %v1001_v46, %s1747_s11 }
 0x55d   : > { %v1017_v50 = vpop.permute.xlu2 %1016 }
 0x575   : > { %v1005_v48 = vpop.permute.xlu0 %1004 }
 0x576   : > { %v1010_v49 = vadd.f32 %v1005_v48, %v998_v47 }
 0x578   : > { %v1022_v1 = vadd.f32 %v1017_v50, %v1010_v49 }
 0x57a   : > { %v1024_v51 = vmul.f32 3.0, %v1022_v1 }
 0x57c   : > { %1026 = vst.msk [vmem:[%s1989_s14] sm:$0xff] %vm563_vm3, %v1024_v51 }
 0x585   : > { %v1007_v2 = vpop.permute.xlu1 %1006  ;;  %v1019_v54 = vpop.permute.xlu0 %1018 }
 0x586   : > { %v1011_v53 = vadd.f32 %v1007_v2, %v999_v52 }
 0x588   : > { %v1023_v3 = vadd.f32 %v1019_v54, %v1011_v53 }
 0x58a   : > { %v1025_v55 = vmul.f32 3.0, %v1023_v3 }
 0x58c   : > { %1027 = vst.msk [vmem:[%s1989_s14 + $0x8] sm:$0xff] %vm563_vm3, %v1025_v55 }
 0x58d PF: > { %s1260_s6 = sshll.u32 %s1724_s12, 4  ;;  %s2277_s4 = sld [smem:[#allocation33_spill]] }
 0x58e   : > { %s1041_s24 = sshll.u32 %s1989_s14, 4  ;;  %s2278_s7 = sand.u32 1, %s1700_s28   ;;  %s1042_s24 = int_to_ptr.vmem [resolvable:$true] %s1041_s24 }
 0x58f   : > { %s1029_s11 = scalar_lea.sflag [#allocation6], %s2278_s7 }
 0x593   : > { %s1040_s22 = scalar_lea.hbm %s2277_s4, %s1260_s6  ;;  %s1622_s12 = scalar_lea.hbm %s2277_s4, 32 }
 0x594   : > { %s1043_s2 = sshll.u32 %s1040_s22, 4  ;;  %s1044_s2 = int_to_ptr.hbm [resolvable:$true] %s1043_s2 }
 0x595   : > { %s1616_s8 = sshra.s32 %s1044_s2, 4  ;;  %s1617_s8 = int_to_ptr.hbm [resolvable:$true] %s1616_s8 }
 0x596   : > { %s1618_s19 = scalar_lea.hbm %s1617_s8, 16  ;;  %p1623_p6 = scmp.lt.s32.totalorder %s1617_s8, %s2277_s4 }
 0x597   : > { %p1619_p13 = scmp.ne.s32.totalorder %s1617_s8, %s1618_s19  ;;  %p1624_p7 = scmp.lt.s32.totalorder %s1622_s12, %s1618_s19 }
 0x599   : > { %p1620_p0 = pnand %p1619_p13, %p1927_p3  ;;  %p1625_p8 = por %p1624_p7, %p1623_p6 }
 0x59b   : > { %p1621_p5 = pneg %p1620_p0 }
 0x59d   : > { %p1626_p11 = pnand %p1625_p8, %p1621_p5 }
 0x59f   : > { %1629 = shalt.err (!%p1626_p11)
}
 0x5a0   : > { %s1751_s14 = smov 128   ;;  %s1752_s17 = smov 8  }
 0x5a1   : > { %1284 = dma.vmem_to_hbm [thread:$0]  (%p1927_p3), %s1042_s24, 256, %s1044_s2, %s1029_s11, %s1751_s14, %s1751_s14, %s1752_s17  }
 0x5a2 PF: > { %p1316_p2 = scmp.ge.s32.totalorder %s1736_s15, 2  ;;  %s1058_s3 = sand.u32 1, %s1696_s27  }
 0x5a3   : > { %s1059_s25 = scalar_lea.sflag [#allocation6], %s1058_s3 }
 0x5a4   : > { %p1304_p4 = pnand %p1316_p2, %p1941_p9 }
 0x5a6   : > { %p1305_p10 = pneg %p1304_p4 }
 0x5a8   : > { %1691 = dma.done.wait (%p1305_p10), %s1059_s25, 256  }
 0x5a9   : > { %1693 = vsyncadd (%p1305_p10), %s1059_s25, 4294967040  ;;  %s27_s15 = sadd.s32 1, %s1736_s15   ;;  %s2279_s23 = sld [smem:[#allocation24_spill]] }
 0x5aa   : > { %p24_p1 = scmp.ge.s32.totalorder %s27_s15, 6   ;;  %s2280_s11 = sld [smem:[#allocation20_spill]] }
 0x5ab   : > { %s2281_s12 = sld [smem:[#allocation21_spill]]  ;;  %s2284_s27 = smov %s1700_s28 }
 0x5ac   : > { %s2282_s13 = sld [smem:[#allocation22_spill]]  ;;  %s2285_s28 = smov %s1704_s29 }
 0x5ad   : > { %s2283_s14 = sld [smem:[#allocation23_spill]]  ;;  %s2286_s29 = smov %s1936_s16 }
 0x5ae   : > { %s2287_s30 = smov %s1712_s9  ;;  %s2288_s9 = smov %s1716_s10 }
 0x5af   : > { %s2289_s10 = smov %s2279_s23  ;;  %26 = sbr.rel (!%p24_p1) target bundleno = 22 (0x16), region = 130 }
 0x5b4   :  { %1065 = vsyncpa [#allocation5], 1 }
 0x5b5   :  { %1067 = vsyncpa [#allocation5 + $0x1], 1 }
 0x5b6   :  { %1068 = vsyncpa [#allocation9], 1 }
 0x5b7   :  { %1069 = vsyncpa [#allocation12], 1 }
 0x5b8   :  { %1070 = vsyncpa [#allocation6], 1 }
 0x5b9   :  { %1072 = vsyncpa [#allocation6 + $0x1], 1 }
 0x5ba   :  { %1073 = vsyncpa [#allocation7], 1 }
 0x5bb   :  { %1075 = vsyncpa [#allocation7 + $0x1], 1 }

</bundles_post_ra>
